<compile_context>
chip_gen: v6e
topology: v6e:2x2x1
jax: 0.10.0
libtpu: 0.0.40
codegen_flags: <defaults>
</compile_context>

<pallas_src>
import math

import jax
import jax.numpy as jnp
from jax.experimental import pallas as pl
from jax.experimental.pallas import tpu as pltpu


def _round_up(x, m):
    return ((x + m - 1) // m) * m


def _conv1d_relu_kernel(x_ref, w_ref, b_ref, o_ref):
    # x_ref: (B_t, L_t + 2, C_in)  per-sentence halo'd input tile (compute dtype)
    # w_ref: (3, C_in, N_pad)      conv taps (compute dtype)
    # b_ref: (1, N_pad)            bias (f32)
    # o_ref: (B_t, L_t, N_pad)     relu(conv1d(x) + bias)
    bt, _, c = x_ref.shape
    lt = o_ref.shape[1]
    n = o_ref.shape[2]
    m = bt * lt

    x = x_ref[...]                                            # (B_t, L_t+2, C_in)
    # bias folded into the accumulator init: one broadcast, outside the tap loop
    acc = jnp.broadcast_to(b_ref[...], (m, n)).astype(jnp.float32)
    for t in range(3):                                        # static unroll: 3 taps
        xt = x[:, t:t + lt, :].reshape(m, c)                  # (M, C_in)
        acc = acc + jnp.dot(xt, w_ref[t],
                            preferred_element_type=jnp.float32)
    o_ref[...] = jnp.maximum(acc, 0.0).reshape(bt, lt, n).astype(o_ref.dtype)


def preprocess_cnn(x, weight, bias, max_length, *,
                   compute_dtype=jnp.bfloat16,
                   seq_tile_cap=512, target_rows=512, interpret=False):
    """x: (batch, seq, in_c); weight: (out_c, in_c, 3); bias: (out_c,).
    Returns (batch, seq, out_c) — matches Preprocess_CNN.forward (dropout in eval mode)."""
    a, b, c = x.shape
    out_c = weight.shape[0]
    assert weight.shape == (out_c, c, 3)
    assert b <= max_length  # mirrors the original F.pad(..., max_length - b) being valid

    out_dtype = x.dtype

    # ---- tiling choices ----------------------------------------------------
    l_t = min(seq_tile_cap, _round_up(b, 16))      # seq tile (sublane/bf16 friendly)
    n_lt = pl.cdiv(b, l_t)                         # number of seq tiles
    l_pad = n_lt * l_t
    b_t = max(1, min(a, max(1, target_rows // l_t)))   # sentences per step (M = B_t*L_t)
    a_pad = _round_up(a, b_t)
    n_pad = _round_up(out_c, 128)                  # lane-dense output channels

    # ---- operand prep (XLA side) --------------------------------------------
    # Pad batch to a multiple of B_t, seq to l_pad, plus one zero halo row per side
    # (conv padding=1).  The max_length tail is never computed: positions >= b only
    # ever contribute zeros, identical to the original pad-then-slice.
    x_pad = jnp.pad(x, ((0, a_pad - a), (1, l_pad - b + 1), (0, 0)))  # (a_pad, l_pad+2, c)
    # Per-seq-tile halo'd view: (a_pad, n_lt, l_t+2, c); only 2 rows/tile duplicated.
    if n_lt == 1:
        x_halo = x_pad[:, None, :, :]
    else:
        x_halo = jnp.stack(
            [x_pad[:, j * l_t: j * l_t + l_t + 2, :] for j in range(n_lt)], axis=1)
    x_halo = x_halo.astype(compute_dtype)

    # (out_c, in_c, 3) -> (3, in_c, n_pad): each tap is a plain (C_in, C_out) matmul,
    # output channels zero-padded to a 128-lane multiple.
    w_k = jnp.transpose(weight, (2, 1, 0))
    w_k = jnp.pad(w_k, ((0, 0), (0, 0), (0, n_pad - out_c))).astype(compute_dtype)
    bias_2d = jnp.pad(bias.astype(jnp.float32), (0, n_pad - out_c)).reshape(1, n_pad)

    # ---- VMEM budget (keep v7x's 64 MiB in mind) -----------------------------
    bpe = jnp.dtype(compute_dtype).itemsize
    obe = jnp.dtype(out_dtype).itemsize
    est = 2 * (b_t * (l_t + 2) * c * bpe          # input block (double buffered)
               + b_t * l_t * n_pad * obe          # output block (double buffered)
               + 3 * c * n_pad * bpe              # resident weight
               + n_pad * 4)                       # bias
    vmem_limit = int(min(max(2 * est + (4 << 20), 32 << 20), 48 << 20))

    grid = (a_pad // b_t, n_lt)
    y = pl.pallas_call(
        _conv1d_relu_kernel,
        out_shape=jax.ShapeDtypeStruct((a_pad, n_lt, l_t, n_pad), out_dtype),
        grid=grid,
        in_specs=[
            pl.BlockSpec((b_t, None, l_t + 2, c), lambda bi, li: (bi, li, 0, 0)),
            pl.BlockSpec((3, c, n_pad), lambda bi, li: (0, 0, 0)),
            pl.BlockSpec((1, n_pad), lambda bi, li: (0, 0)),
        ],
        out_specs=pl.BlockSpec((b_t, None, l_t, n_pad),
                               lambda bi, li: (bi, li, 0, 0)),
        compiler_params=pltpu.CompilerParams(
            dimension_semantics=("parallel", "parallel"),
            vmem_limit_bytes=vmem_limit),
        interpret=interpret,
    )(x_halo, w_k, bias_2d)

    # (a_pad, n_lt, l_t, n_pad) -> contiguous seq -> strip batch/seq/channel padding.
    y = y.reshape(a_pad, l_pad, n_pad)
    return y[:a, :b, :out_c]


def _reference(x, weight, bias, max_length):
    """Pure-JAX reference mirroring the PyTorch forward (dropout in eval mode)."""
    a, b, c = x.shape
    xm = jnp.pad(x, ((0, 0), (0, max_length - b), (0, 0)))     # (a, L, c)
    x_ncl = jnp.transpose(xm, (0, 2, 1))                       # (a, c, L)
    y = jax.lax.conv_general_dilated(
        x_ncl, weight, window_strides=(1,), padding=((1, 1),),
        dimension_numbers=('NCH', 'OIH', 'NCH'))
    y = jnp.maximum(y + bias[None, :, None], 0.0)
    return jnp.transpose(y, (0, 2, 1))[:, :b, :]


if __name__ == "__main__":
    # Small shapes consistent with the module: (batch, seq, in_c) input.
    batch, seq, in_c, out_c, max_length = 2, 8, 16, 32, 16

    key = jax.random.PRNGKey(0)
    kx, kw, kb = jax.random.split(key, 3)

    x = jax.random.normal(kx, (batch, seq, in_c), dtype=jnp.float32)

    # Deterministic Conv1d-style init: U(-k, k) with k = 1/sqrt(in_c * kernel_size).
    fan_in = in_c * 3
    bound = 1.0 / math.sqrt(fan_in)
    weight = jax.random.uniform(kw, (out_c, in_c, 3), dtype=jnp.float32,
                                minval=-bound, maxval=bound)
    bias = jax.random.uniform(kb, (out_c,), dtype=jnp.float32,
                              minval=-bound, maxval=bound)

    ref = _reference(x, weight, bias, max_length)

    # Exact f32 path (bitwise-faithful semantics).
    out_f32 = jax.block_until_ready(
        preprocess_cnn(x, weight, bias, max_length, compute_dtype=jnp.float32))
    assert out_f32.shape == (batch, seq, out_c), out_f32.shape
    assert jnp.allclose(out_f32, ref, atol=1e-5, rtol=1e-5), "f32 mismatch vs reference"

    # Default MXU-friendly path: bf16 operands, f32 accumulation.
    out_bf16 = jax.block_until_ready(
        preprocess_cnn(x, weight, bias, max_length))
    assert out_bf16.shape == (batch, seq, out_c), out_bf16.shape
    assert jnp.allclose(out_bf16, ref, atol=5e-2, rtol=5e-2), "bf16 mismatch vs reference"

    print("KERNEL_OK")
</pallas_src>

<mosaic_0001>
module attributes {stable_mosaic.version = 11 : i64} {
  func.func @_conv1d_relu_kernel(%arg0: i32, %arg1: i32, %arg2: memref<2x1x18x16xf32, #tpu.memory_space<vmem>>, %arg3: memref<3x16x128xf32, #tpu.memory_space<vmem>>, %arg4: memref<1x128xf32, #tpu.memory_space<vmem>>, %arg5: memref<2x1x16x128xf32, #tpu.memory_space<vmem>>) attributes {dimension_semantics = [#tpu.dimension_semantics<parallel>, #tpu.dimension_semantics<parallel>], iteration_bounds = array<i64: 1, 1>, scalar_prefetch = 0 : i64, scratch_operands = 0 : i64, tpu.core_type = #tpu.core_type<tc>, window_params = [{transform_indices = @transform_0, window_bounds = array<i64: 2, 1, 18, 16>}, {pipeline_mode = #tpu.pipeline_mode<synchronous>, transform_indices = @transform_1, window_bounds = array<i64: 3, 16, 128>}, {pipeline_mode = #tpu.pipeline_mode<synchronous>, transform_indices = @transform_2, window_bounds = array<i64: 1, 128>}, {transform_indices = @transform_3, window_bounds = array<i64: 2, 1, 16, 128>}]} {
    %c0 = arith.constant 0 : index
    %c0_0 = arith.constant 0 : index
    %c0_1 = arith.constant 0 : index
    %c0_2 = arith.constant 0 : index
    %0 = vector.load %arg2[%c0, %c0_0, %c0_1, %c0_2] : memref<2x1x18x16xf32, #tpu.memory_space<vmem>>, vector<2x1x18x16xf32>
    %1 = vector.shape_cast %0 : vector<2x1x18x16xf32> to vector<2x18x16xf32>
    %c0_3 = arith.constant 0 : index
    %c0_4 = arith.constant 0 : index
    %2 = vector.load %arg4[%c0_3, %c0_4] : memref<1x128xf32, #tpu.memory_space<vmem>>, vector<1x128xf32>
    %3 = vector.shape_cast %2 : vector<1x128xf32> to vector<1x128xf32>
    %4 = vector.broadcast %3 : vector<1x128xf32> to vector<32x128xf32>
    %5 = vector.extract_strided_slice %1 {offsets = [0, 0, 0], sizes = [2, 16, 16], strides = [1, 1, 1]} : vector<2x18x16xf32> to vector<2x16x16xf32>
    %6 = vector.shape_cast %5 : vector<2x16x16xf32> to vector<32x16xf32>
    %c0_5 = arith.constant 0 : index
    %c0_6 = arith.constant 0 : index
    %c0_7 = arith.constant 0 : index
    %7 = vector.load %arg3[%c0_5, %c0_6, %c0_7] : memref<3x16x128xf32, #tpu.memory_space<vmem>>, vector<1x16x128xf32>
    %8 = vector.shape_cast %7 : vector<1x16x128xf32> to vector<16x128xf32>
    %cst = arith.constant dense<0.000000e+00> : vector<32x128xf32>
    %9 = tpu.matmul %6, %8, %cst {dimension_numbers = #tpu.dot_dimension_numbers<[1], [0], [0], [1], [0, 0, 1, 1], [], []>} : vector<32x16xf32>, vector<16x128xf32>, vector<32x128xf32> -> vector<32x128xf32>
    %10 = arith.addf %4, %9 : vector<32x128xf32>
    %11 = vector.extract_strided_slice %1 {offsets = [0, 1, 0], sizes = [2, 16, 16], strides = [1, 1, 1]} : vector<2x18x16xf32> to vector<2x16x16xf32>
    %12 = vector.shape_cast %11 : vector<2x16x16xf32> to vector<32x16xf32>
    %c1 = arith.constant 1 : index
    %c0_8 = arith.constant 0 : index
    %c0_9 = arith.constant 0 : index
    %13 = vector.load %arg3[%c1, %c0_8, %c0_9] : memref<3x16x128xf32, #tpu.memory_space<vmem>>, vector<1x16x128xf32>
    %14 = vector.shape_cast %13 : vector<1x16x128xf32> to vector<16x128xf32>
    %cst_10 = arith.constant dense<0.000000e+00> : vector<32x128xf32>
    %15 = tpu.matmul %12, %14, %cst_10 {dimension_numbers = #tpu.dot_dimension_numbers<[1], [0], [0], [1], [0, 0, 1, 1], [], []>} : vector<32x16xf32>, vector<16x128xf32>, vector<32x128xf32> -> vector<32x128xf32>
    %16 = arith.addf %10, %15 : vector<32x128xf32>
    %17 = vector.extract_strided_slice %1 {offsets = [0, 2, 0], sizes = [2, 16, 16], strides = [1, 1, 1]} : vector<2x18x16xf32> to vector<2x16x16xf32>
    %18 = vector.shape_cast %17 : vector<2x16x16xf32> to vector<32x16xf32>
    %c2 = arith.constant 2 : index
    %c0_11 = arith.constant 0 : index
    %c0_12 = arith.constant 0 : index
    %19 = vector.load %arg3[%c2, %c0_11, %c0_12] : memref<3x16x128xf32, #tpu.memory_space<vmem>>, vector<1x16x128xf32>
    %20 = vector.shape_cast %19 : vector<1x16x128xf32> to vector<16x128xf32>
    %cst_13 = arith.constant dense<0.000000e+00> : vector<32x128xf32>
    %21 = tpu.matmul %18, %20, %cst_13 {dimension_numbers = #tpu.dot_dimension_numbers<[1], [0], [0], [1], [0, 0, 1, 1], [], []>} : vector<32x16xf32>, vector<16x128xf32>, vector<32x128xf32> -> vector<32x128xf32>
    %22 = arith.addf %16, %21 : vector<32x128xf32>
    %cst_14 = arith.constant 0.000000e+00 : f32
    %23 = vector.broadcast %cst_14 : f32 to vector<32x128xf32>
    %24 = arith.maximumf %22, %23 : vector<32x128xf32>
    %25 = vector.shape_cast %24 : vector<32x128xf32> to vector<2x16x128xf32>
    %c0_15 = arith.constant 0 : index
    %c0_16 = arith.constant 0 : index
    %c0_17 = arith.constant 0 : index
    %c0_18 = arith.constant 0 : index
    %26 = vector.load %arg5[%c0_15, %c0_16, %c0_17, %c0_18] : memref<2x1x16x128xf32, #tpu.memory_space<vmem>>, vector<2x1x16x128xf32>
    %27 = vector.shape_cast %26 : vector<2x1x16x128xf32> to vector<2x16x128xf32>
    %28 = vector.shape_cast %25 : vector<2x16x128xf32> to vector<2x1x16x128xf32>
    tpu.vector_store %arg5[%c0_15, %c0_16, %c0_17, %c0_18], %28 {strides = array<i32>} : memref<2x1x16x128xf32, #tpu.memory_space<vmem>>, vector<2x1x16x128xf32>,
    return
  }
  func.func @transform_0(%arg0: i32, %arg1: i32) -> (i32, i32, i32, i32) {
    %c0_i32 = arith.constant 0 : i32
    %c0_i32_0 = arith.constant 0 : i32
    %c0_i32_1 = arith.constant 0 : i32
    return %arg0, %arg1, %c0_i32, %c0_i32_0 : i32, i32, i32, i32
  }
  func.func @transform_1(%arg0: i32, %arg1: i32) -> (i32, i32, i32) {
    %c0_i32 = arith.constant 0 : i32
    %c0_i32_0 = arith.constant 0 : i32
    %c0_i32_1 = arith.constant 0 : i32
    %c0_i32_2 = arith.constant 0 : i32
    return %c0_i32, %c0_i32_0, %c0_i32_1 : i32, i32, i32
  }
  func.func @transform_2(%arg0: i32, %arg1: i32) -> (i32, i32) {
    %c0_i32 = arith.constant 0 : i32
    %c0_i32_0 = arith.constant 0 : i32
    %c0_i32_1 = arith.constant 0 : i32
    return %c0_i32, %c0_i32_0 : i32, i32
  }
  func.func @transform_3(%arg0: i32, %arg1: i32) -> (i32, i32, i32, i32) {
    %c0_i32 = arith.constant 0 : i32
    %c0_i32_0 = arith.constant 0 : i32
    %c0_i32_1 = arith.constant 0 : i32
    return %arg0, %arg1, %c0_i32, %c0_i32_0 : i32, i32, i32, i32
  }
}

</mosaic_0001>

<bundles_post_ra>
// kernel: tpu_custom_call.1
= control target key start
LH: loop header
LB: loop body
LE: loop exit
PB: predicated region body
PF: predicated region fallthrough
CT: control target
= control target key end

     0   :  { %vm30_vm0 = vcmask 130048   ;;  %vm134_vm1 = vcmask 1046528   ;;  %s559_s0 = inlined_call_operand.vmem [shape: f32[2,1,18,16], index: 0, kind: input, shape index: {}]   ;;  %s560_s1 = inlined_call_operand.vmem [shape: f32[3,16,128], index: 1, kind: input, shape index: {}]   ;;  %s561_s2 = inlined_call_operand.vmem [shape: f32[1,128], index: 2, kind: input, shape index: {}]   ;;  %s562_s3 = inlined_call_operand.hbm [shape: f32[2,1,16,128], index: 3, kind: output, shape index: {}]  }
   0x1   :  { %v29_v0 = vld [vmem:[%s560_s1 + $0x8] sm:$0xff]  ;;  %v28_v1 = vld [vmem:[%s560_s1] sm:$0xff]  ;;  %v18_v2 = vld [vmem:[%s559_s0 + $0x18] sm:$0xff] }
   0x2   :  { %445 = vmatprep.subr.mxu1 %v29_v0  ;;  %415 = vmatprep.subr.mxu0 %v29_v0  ;;  %v15_v3 = vld [vmem:[%s559_s0] sm:$0xff]  ;;  %v16_v4 = vld [vmem:[%s559_s0 + $0x8] sm:$0xff]  ;;  %v386_v7 = vld [vmem:[%s560_s1 + $0x18] sm:$0xff]  ;;  %v140_v10 = vrot.slane %v18_v2, 1 }
   0x3   :  { %447 = vmatpush3.msra.mxu1 %v29_v0  ;;  %416 = vmatpush3.msra.mxu0 %v29_v0  ;;  %v135_v5 = vrot.slane %v15_v3, 1  ;;  %v19_v6 = vld [vmem:[%s559_s0 + $0x20] sm:$0xff]  ;;  %v136_v8 = vrot.slane %v16_v4, 1  ;;  %v17_v9 = vld [vmem:[%s559_s0 + $0x10] sm:$0x3]  ;;  %v246_v11 = vrot.slane %v15_v3, 2 }
   0x4   :  { %446 = vmatprep.subr.mxu1 %v28_v1  ;;  %417 = vmatprep.subr.mxu0 %v28_v1  ;;  %v141_v12 = vrot.slane %v19_v6, 1  ;;  %v392_v13 = vld [vmem:[%s560_s1 + $0x28] sm:$0xff]  ;;  %v138_v14 = vrot.slane %v17_v9, 1  ;;  %v247_v15 = vrot.slane %v16_v4, 2  ;;  %v385_v16 = vld [vmem:[%s560_s1 + $0x10] sm:$0xff] }
   0x5   :  { %448 = vmatpush3.msra.mxu1 %v28_v1  ;;  %422 = vmatprep.mubr.msk.f32.mxu1 %vm30_vm0, %v18_v2  ;;  %v20_v17 = vld [vmem:[%s559_s0 + $0x28] sm:$0x3] }
   0x6   :  { %418 = vmatpush3.msra.mxu0 %v28_v1  ;;  %419 = vmatprep.mubr.msk.f32.mxu0 %vm30_vm0, %v15_v3 }
   0x7   :  { %8 = vsyncpa [#allocation3], 0  ;;  %423 = vmatmul.mubr.msk.f32.vlgmr.msra.gmra.mxu1 %vm30_vm0, %v19_v6  ;;  %425 = vmatprep.subr.mxu1 %v386_v7  ;;  %vm245_vm2 = vcmask 1045504   ;;  %v249_v18 = vrot.slane %v17_v9, 2  ;;  %v251_v19 = vrot.slane %v18_v2, 2  ;;  %v252_v20 = vrot.slane %v19_v6, 2 }
   0x8   :  { %420 = vmatmul.mubr.msk.f32.vlgmr.msra.gmra.mxu0 %vm30_vm0, %v16_v4  ;;  %426 = vmatpush3.msra.mxu1 %v386_v7  ;;  %v137_v21 = vsel %vm134_vm1, %v135_v5, %v136_v8  ;;  %v391_v22 = vld [vmem:[%s560_s1 + $0x20] sm:$0xff]  ;;  %v139_v23 = vsel %vm134_vm1, %v136_v8, %v138_v14  ;;  %v143_v24 = vrot.slane %v20_v17, 1  ;;  %v248_v25 = vsel %vm245_vm2, %v246_v11, %v247_v15 }
   0x9   :  { %435 = vmatprep.subr.mxu0 %v392_v13  ;;  %427 = vmatprep.subr.mxu1 %v385_v16  ;;  %v142_v26 = vsel %vm134_vm1, %v140_v10, %v141_v12  ;;  %v250_v27 = vsel %vm245_vm2, %v247_v15, %v249_v18  ;;  %v254_v28 = vrot.slane %v20_v17, 2  ;;  %v253_v29 = vsel %vm245_vm2, %v251_v19, %v252_v20  ;;  %v380_v33 = vld [vmem:[%s561_s2] ss:$0 sm:$0xff]  ;;  %s474_s2 = smov [#allocation2]  }
   0xa   :  { %436 = vmatpush3.msra.mxu0 %v392_v13  ;;  %428 = vmatpush3.msra.mxu1 %v385_v16  ;;  %v144_v30 = vsel %vm134_vm1, %v141_v12, %v143_v24  ;;  %s369_s9 = sshll.u32 %s474_s2, 4  ;;  %s370_s9 = int_to_ptr.vmem [resolvable:$true] %s369_s9 }
   0xb   :  { %429 = vmatprep.mubr.msk.f32.mxu1 %vm30_vm0, %v137_v21  ;;  %437 = vmatprep.subr.mxu0 %v391_v22  ;;  %v255_v31 = vsel %vm245_vm2, %v252_v20, %v254_v28  ;;  %s452_s10 = scalar_lea.vmem %s370_s9, 512  ;;  %p457_p1 = scmp.lt.s32.totalorder %s370_s9, %s370_s9 }
   0xc   :  { %430 = vmatmul.mubr.msk.f32.vlgmr.msra.gmra.mxu1 %vm30_vm0, %v139_v23  ;;  %438 = vmatpush3.msra.mxu0 %v391_v22  ;;  %p453_p0 = scmp.ne.s32.totalorder %s370_s9, %s452_s10  ;;  %p458_p2 = scmp.lt.s32.totalorder %s452_s10, %s452_s10 }
   0xd   :  { %439 = vmatprep.mubr.msk.f32.mxu0 %vm30_vm0, %v248_v25  ;;  %432 = vmatprep.mubr.msk.f32.mxu1 %vm30_vm0, %v142_v26 }
   0xe   :  { %440 = vmatmul.mubr.msk.f32.vlgmr.msra.gmra.mxu0 %vm30_vm0, %v250_v27  ;;  %p459_p3 = por %p458_p2, %p457_p1 }
   0xf   :  { %442 = vmatprep.mubr.msk.f32.mxu0 %vm30_vm0, %v253_v29 }
  0x10   :  { %433 = vmatmul.mubr.msk.f32.gmra.mxu1 %vm30_vm0, %v144_v30  ;;  %p460_p4 = pnand %p459_p3, %p453_p0 }
  0x12   :  { %443 = vmatmul.mubr.msk.f32.gmra.mxu0 %vm30_vm0, %v255_v31 }
  0xc7   :  { %v424_v32 = vpop.f32.mrf.mxu1 }
  0xc8   :  { %v421_v34 = vpop.f32.mrf.mxu0  ;;  %v131_v43 = vadd.f32 %v424_v32, %v380_v33 }
  0xc9   :  { %v129_v35 = vadd.f32 %v421_v34, %v380_v33  ;;  %v119_v36 = vpop.f32.mrf.mxu1 }
  0xca   :  { %v109_v37 = vpop.f32.mrf.mxu0  ;;  %v130_v48 = vadd.f32 %v380_v33, %v119_v36 }
  0xcb   :  { %v128_v39 = vadd.f32 %v380_v33, %v109_v37 }
  0xcc   :  { %v431_v38 = vpop.f32.mrf.mxu1 }
  0xcd   :  { %v242_v40 = vadd.f32 %v431_v38, %v129_v35 }
  0xce   :  { %v441_v41 = vpop.f32.mrf.mxu0  ;;  %v222_v42 = vpop.f32.mrf.mxu1 }
  0xcf   :  { %v353_v44 = vadd.f32 %v441_v41, %v242_v40  ;;  %v241_v45 = vadd.f32 %v222_v42, %v128_v39 }
  0xd0   :  { %v333_v46 = vpop.f32.mrf.mxu0  ;;  %v434_v47 = vpop.f32.mrf.mxu1 }
  0xd1   :  { %v357_v49 = vmax.f32 %v353_v44, 0.0  ;;  %v352_v50 = vadd.f32 %v333_v46, %v241_v45  ;;  %v244_v51 = vadd.f32 %v434_v47, %v131_v43 }
  0xd2   :  { %v444_v52 = vpop.f32.mrf.mxu0  ;;  %v232_v53 = vpop.f32.mrf.mxu1 }
  0xd3   :  { %361 = vst [vmem:[#allocation2 + $0x8] sm:$0xff] %v357_v49  ;;  %v356_v54 = vmax.f32 %v352_v50, 0.0  ;;  %v355_v55 = vadd.f32 %v444_v52, %v244_v51  ;;  %v243_v56 = vadd.f32 %v232_v53, %v130_v48 }
  0xd4   :  { %v343_v57 = vpop.f32.mrf.mxu0 }
  0xd5   :  { %360 = vst [vmem:[#allocation2] sm:$0xff] %v356_v54  ;;  %v359_v58 = vmax.f32 %v355_v55, 0.0  ;;  %v354_v59 = vadd.f32 %v343_v57, %v243_v56 }
  0xd7   :  { %363 = vst [vmem:[#allocation2 + $0x18] sm:$0xff] %v359_v58  ;;  %v358_v60 = vmax.f32 %v354_v59, 0.0 }
  0xd9   :  { %362 = vst [vmem:[#allocation2 + $0x10] sm:$0xff] %v358_v60 }
  0xda   :  { %463 = shalt.err (!%p460_p4)
}
  0xdb   :  { %s475_s11 = smov 128   ;;  %s476_s12 = smov 8  }
  0xdc   :  { %375 = dma.vmem_to_hbm [thread:$0]  %s370_s9, 512, %s562_s3, [#allocation3], %s475_s11, %s475_s11, %s476_s12  }
  0xdd   :  { %472 = dma.done.wait [#allocation3], 512  }
  0xde   :  { %473 = vsyncadd [#allocation3], 4294966784 }
  0xdf   :  { %379 = vsyncpa [#allocation3], 1 }

</bundles_post_ra>
